<compile_context>
chip_gen: v5e
topology: v5e:2x2
jax: 0.10.0
libtpu: 0.0.40
codegen_flags: <defaults>
</compile_context>

<pallas_src>
import jax
import jax.numpy as jnp
from jax.experimental import pallas as pl
from jax.experimental.pallas import tpu as pltpu


def _vmem_limit_bytes(bt: int, T: int, D: int, H: int) -> int:
    """Rough VMEM budget: double-buffered blocks + live intermediates + margin."""
    f32, bf16 = 4, 2
    x_blk = bt * T * D * bf16
    w_blk = D * 3 * H * bf16
    o_blk = bt * T * H * f32
    qkv = bt * T * 3 * H * f32
    scores = bt * T * T * f32
    est = 2 * (x_blk + w_blk + o_blk) + qkv + 4 * scores
    return int(min(max(2 * est, 32 * 1024 * 1024), 100 * 1024 * 1024))


def make_attention_head_kernel(head_size: int, batch_tile: int,
                               seq_len: int, d_model: int):
    H = head_size
    scale = 1.0 / (head_size ** 0.5)

    def kernel(x_ref, wqkv_ref, o_ref):
        bt, T, D = batch_tile, seq_len, d_model

        # --- fused QKV projection: one (bt*T, D) @ (D, 3H) MXU matmul ---
        # bf16 operands, f32 accumulation.
        x2d = x_ref[...].reshape(bt * T, D)                          # bf16
        qkv = jnp.dot(x2d, wqkv_ref[...],
                      preferred_element_type=jnp.float32)            # (bt*T, 3H) f32
        qkv = qkv.reshape(bt, T, 3 * H)

        # fold 1/sqrt(H) into q; cast operands to bf16 only at matmul boundary
        q = (qkv[:, :, 0 * H:1 * H] * scale).astype(jnp.bfloat16)    # (bt, T, H)
        k = qkv[:, :, 1 * H:2 * H].astype(jnp.bfloat16)              # (bt, T, H)
        v = qkv[:, :, 2 * H:3 * H].astype(jnp.bfloat16)              # (bt, T, H)

        # --- scores = q @ k^T (contraction on head dim, no explicit k.T) ---
        scores = jax.lax.dot_general(
            q, k,
            dimension_numbers=(((2,), (2,)), ((0,), (0,))),
            preferred_element_type=jnp.float32)                      # (bt, T, T) f32

        # causal mask == masked_fill(tril == 0, -inf); large finite negative
        # is NaN-safe if padding/segment masks are ever added
        row = jax.lax.broadcasted_iota(jnp.int32, (bt, T, T), 1)
        col = jax.lax.broadcasted_iota(jnp.int32, (bt, T, T), 2)
        scores = jnp.where(col <= row, scores, -1e30)

        # --- softmax in f32 ---
        m = jnp.max(scores, axis=-1, keepdims=True)
        p = jnp.exp(scores - m)
        denom = jnp.sum(p, axis=-1, keepdims=True)
        wei = p * pl.reciprocal(denom, approx=True)                  # EUP, not VPU div

        # TODO(synk): training-mode dropout on `wei` (pltpu.prng_random_bits)
        # not implemented; eval-mode dropout is identity, matching forward().

        # --- output = wei @ v (bf16 operands, f32 accumulate) ---
        o_ref[...] = jax.lax.dot_general(
            wei.astype(jnp.bfloat16), v,
            dimension_numbers=(((2,), (1,)), ((0,), (0,))),
            preferred_element_type=jnp.float32)                      # (bt, T, H) f32

    return kernel


def attention_head(x, wq, wk, wv, head_size: int, batch_tile=None):
    """x: [B, T, D] (any float dtype); wq/wk/wv: [D, H] (transposed nn.Linear.weight)."""
    B, T, D = x.shape
    H = head_size

    # Batch multiple rows per grid step so bt*T approaches the 128-row MXU
    # M-dimension; keep it a divisor of B.
    if batch_tile is None:
        batch_tile = min(B, max(1, 128 // max(T, 1)))
    batch_tile = max(1, min(batch_tile, B))
    while B % batch_tile != 0:
        batch_tile -= 1
    grid_b = B // batch_tile

    # Fuse the three projections into one [D, 3H] weight; bf16 MXU operands.
    wqkv = jnp.concatenate([wq, wk, wv], axis=1).astype(jnp.bfloat16)
    x_bf16 = x.astype(jnp.bfloat16)

    kernel = make_attention_head_kernel(H, batch_tile, T, D)

    return pl.pallas_call(
        kernel,
        out_shape=jax.ShapeDtypeStruct((B, T, H), jnp.float32),
        grid_spec=pltpu.PrefetchScalarGridSpec(
            num_scalar_prefetch=0,
            grid=(grid_b,),
            in_specs=[
                pl.BlockSpec((batch_tile, T, D), lambda b: (b, 0, 0)),
                pl.BlockSpec((D, 3 * H), lambda b: (0, 0)),
            ],
            out_specs=pl.BlockSpec((batch_tile, T, H), lambda b: (b, 0, 0)),
        ),
        compiler_params=pltpu.CompilerParams(
            dimension_semantics=("parallel",),
            vmem_limit_bytes=_vmem_limit_bytes(batch_tile, T, D, H),
        ),
    )(x_bf16, wqkv)


def reference_attention_head(x, wq, wk, wv, head_size: int):
    """Pure f32 JAX reference (matches the PyTorch forward in eval mode)."""
    q = x @ wq
    k = x @ wk
    v = x @ wv
    scores = (q @ jnp.swapaxes(k, -2, -1)) / (head_size ** 0.5)
    T = x.shape[1]
    mask = jnp.tril(jnp.ones((T, T), dtype=bool))
    scores = jnp.where(mask, scores, -jnp.inf)
    wei = jax.nn.softmax(scores, axis=-1)
    return wei @ v


if __name__ == "__main__":
    # Small shapes consistent with the module's forward
    B, T, D, H = 2, 8, 32, 16          # batch, seq (block_size), d_model, head_size

    key = jax.random.PRNGKey(0)
    kx, kq, kk, kv = jax.random.split(key, 4)

    x = jax.random.normal(kx, (B, T, D), dtype=jnp.float32)
    # nn.Linear(d_model, head_size, bias=False).weight has shape (H, D);
    # we store the transpose (D, H) so x @ W matches F.linear(x, W).
    wq = jax.random.normal(kq, (D, H), dtype=jnp.float32) * 0.1
    wk = jax.random.normal(kk, (D, H), dtype=jnp.float32) * 0.1
    wv = jax.random.normal(kv, (D, H), dtype=jnp.float32) * 0.1

    out = attention_head(x, wq, wk, wv, H)
    out = jax.block_until_ready(out)

    ref = reference_attention_head(x, wq, wk, wv, H)
    assert out.shape == (B, T, H)
    # bf16 matmul operands + approx reciprocal -> looser tolerance than pure f32
    assert jnp.allclose(out, ref, atol=3e-2, rtol=3e-2), (
        "mismatch vs reference: max abs diff = "
        f"{float(jnp.max(jnp.abs(out - ref)))}")

    print("KERNEL_OK")
</pallas_src>

<mosaic_0001>
module attributes {stable_mosaic.version = 11 : i64} {
  func.func @kernel(%arg0: i32, %arg1: memref<2x8x32xbf16, #tpu.memory_space<vmem>>, %arg2: memref<32x48xbf16, #tpu.memory_space<vmem>>, %arg3: memref<2x8x16xf32, #tpu.memory_space<vmem>>) attributes {dimension_semantics = [#tpu.dimension_semantics<parallel>], iteration_bounds = array<i64: 1>, scalar_prefetch = 0 : i64, scratch_operands = 0 : i64, tpu.core_type = #tpu.core_type<tc>, window_params = [{transform_indices = @transform_0, window_bounds = array<i64: 2, 8, 32>}, {pipeline_mode = #tpu.pipeline_mode<synchronous>, transform_indices = @transform_1, window_bounds = array<i64: 32, 48>}, {transform_indices = @transform_2, window_bounds = array<i64: 2, 8, 16>}]} {
    %c0 = arith.constant 0 : index
    %c0_0 = arith.constant 0 : index
    %c0_1 = arith.constant 0 : index
    %0 = vector.load %arg1[%c0, %c0_0, %c0_1] : memref<2x8x32xbf16, #tpu.memory_space<vmem>>, vector<2x8x32xbf16>
    %1 = vector.shape_cast %0 : vector<2x8x32xbf16> to vector<16x32xbf16>
    %c0_2 = arith.constant 0 : index
    %c0_3 = arith.constant 0 : index
    %2 = vector.load %arg2[%c0_2, %c0_3] : memref<32x48xbf16, #tpu.memory_space<vmem>>, vector<32x48xbf16>
    %cst = arith.constant dense<0.000000e+00> : vector<16x48xf32>
    %3 = tpu.matmul %1, %2, %cst {dimension_numbers = #tpu.dot_dimension_numbers<[1], [0], [0], [1], [0, 0, 1, 1], [], []>} : vector<16x32xbf16>, vector<32x48xbf16>, vector<16x48xf32> -> vector<16x48xf32>
    %4 = vector.shape_cast %3 : vector<16x48xf32> to vector<2x8x48xf32>
    %5 = vector.extract_strided_slice %4 {offsets = [0, 0, 0], sizes = [2, 8, 16], strides = [1, 1, 1]} : vector<2x8x48xf32> to vector<2x8x16xf32>
    %cst_4 = arith.constant 2.500000e-01 : f32
    %6 = vector.broadcast %cst_4 : f32 to vector<2x8x16xf32>
    %7 = arith.mulf %5, %6 : vector<2x8x16xf32>
    %8 = arith.truncf %7 : vector<2x8x16xf32> to vector<2x8x16xbf16>
    %9 = vector.extract_strided_slice %4 {offsets = [0, 0, 16], sizes = [2, 8, 16], strides = [1, 1, 1]} : vector<2x8x48xf32> to vector<2x8x16xf32>
    %10 = arith.truncf %9 : vector<2x8x16xf32> to vector<2x8x16xbf16>
    %11 = vector.extract_strided_slice %4 {offsets = [0, 0, 32], sizes = [2, 8, 16], strides = [1, 1, 1]} : vector<2x8x48xf32> to vector<2x8x16xf32>
    %12 = arith.truncf %11 : vector<2x8x16xf32> to vector<2x8x16xbf16>
    %cst_5 = arith.constant dense<0.000000e+00> : vector<2x8x8xf32>
    %13 = tpu.matmul %8, %10, %cst_5 {dimension_numbers = #tpu.dot_dimension_numbers<[2], [2], [1], [1], [0, 0, 0, 1, 1, 1], [0], [0]>} : vector<2x8x16xbf16>, vector<2x8x16xbf16>, vector<2x8x8xf32> -> vector<2x8x8xf32>
    %14 = tpu.iota {dimensions = array<i32: 1>} : vector<2x8x8xi32>
    %15 = tpu.iota {dimensions = array<i32: 2>} : vector<2x8x8xi32>
    %16 = arith.cmpi sle, %15, %14 : vector<2x8x8xi32>
    %cst_6 = arith.constant -1.000000e+30 : f32
    %17 = vector.broadcast %cst_6 : f32 to vector<2x8x8xf32>
    %18 = arith.select %16, %13, %17 : vector<2x8x8xi1>, vector<2x8x8xf32>
    %cst_7 = arith.constant dense<0xFF800000> : vector<2x8xf32>
    %19 = vector.multi_reduction <maximumf>, %18, %cst_7 [2] : vector<2x8x8xf32> to vector<2x8xf32>
    %20 = vector.shape_cast %19 : vector<2x8xf32> to vector<2x8x1xf32>
    %21 = vector.broadcast %20 : vector<2x8x1xf32> to vector<2x8x8xf32>
    %22 = arith.subf %18, %21 : vector<2x8x8xf32>
    %23 = math.exp %22 : vector<2x8x8xf32>
    %cst_8 = arith.constant dense<0.000000e+00> : vector<2x8xf32>
    %24 = vector.multi_reduction <add>, %23, %cst_8 [2] : vector<2x8x8xf32> to vector<2x8xf32>
    %25 = vector.shape_cast %24 : vector<2x8xf32> to vector<2x8x1xf32>
    %26 = tpu.reciprocal %25 {approx = true} : vector<2x8x1xf32> -> vector<2x8x1xf32>
    %27 = vector.broadcast %26 : vector<2x8x1xf32> to vector<2x8x8xf32>
    %28 = arith.mulf %23, %27 : vector<2x8x8xf32>
    %29 = arith.truncf %28 : vector<2x8x8xf32> to vector<2x8x8xbf16>
    %cst_9 = arith.constant dense<0.000000e+00> : vector<2x8x16xf32>
    %30 = tpu.matmul %29, %12, %cst_9 {dimension_numbers = #tpu.dot_dimension_numbers<[2], [1], [1], [2], [0, 0, 0, 1, 1, 2], [0], [0]>} : vector<2x8x8xbf16>, vector<2x8x16xbf16>, vector<2x8x16xf32> -> vector<2x8x16xf32>
    %c0_10 = arith.constant 0 : index
    %c0_11 = arith.constant 0 : index
    %c0_12 = arith.constant 0 : index
    %31 = vector.load %arg3[%c0_10, %c0_11, %c0_12] : memref<2x8x16xf32, #tpu.memory_space<vmem>>, vector<2x8x16xf32>
    tpu.vector_store %arg3[%c0_10, %c0_11, %c0_12], %30 {strides = array<i32>} : memref<2x8x16xf32, #tpu.memory_space<vmem>>, vector<2x8x16xf32>,
    return
  }
  func.func @transform_0(%arg0: i32) -> (i32, i32, i32) {
    %c0_i32 = arith.constant 0 : i32
    %c0_i32_0 = arith.constant 0 : i32
    %c0_i32_1 = arith.constant 0 : i32
    return %arg0, %c0_i32, %c0_i32_0 : i32, i32, i32
  }
  func.func @transform_1(%arg0: i32) -> (i32, i32) {
    %c0_i32 = arith.constant 0 : i32
    %c0_i32_0 = arith.constant 0 : i32
    %c0_i32_1 = arith.constant 0 : i32
    return %c0_i32, %c0_i32_0 : i32, i32
  }
  func.func @transform_2(%arg0: i32) -> (i32, i32, i32) {
    %c0_i32 = arith.constant 0 : i32
    %c0_i32_0 = arith.constant 0 : i32
    %c0_i32_1 = arith.constant 0 : i32
    return %arg0, %c0_i32, %c0_i32_0 : i32, i32, i32
  }
}

</mosaic_0001>

<bundles_post_ra>
// kernel: tpu_custom_call.1
= control target key start
LH: loop header
LB: loop body
LE: loop exit
PB: predicated region body
PF: predicated region fallthrough
CT: control target
= control target key end

     0   :  { %7 = vsyncpa [#allocation3], 0  ;;  %s398_s0 = inlined_call_operand.hbm [shape: bf16[2,8,32], index: 0, kind: input, shape index: {}]   ;;  %s399_s1 = inlined_call_operand.hbm [shape: bf16[32,48], index: 1, kind: input, shape index: {}]   ;;  %s400_s2 = inlined_call_operand.hbm [shape: f32[2,8,16], index: 2, kind: output, shape index: {}]  }
   0x1   :  { %8 = vsyncpa [#allocation6], 0 }
   0x2   :  { %9 = vsyncpa [#allocation4], 0  ;;  %s14_s11 = sshll.u32 %s398_s0, 4  ;;  %s353_s12 = smov [#allocation2]   ;;  %s15_s11 = int_to_ptr.hbm [resolvable:$true] %s14_s11 }
   0x3   :  { %s16_s13 = sshll.u32 %s353_s12, 4  ;;  %s27_s16 = sshll.u32 %s399_s1, 4  ;;  %s17_s13 = int_to_ptr.vmem [resolvable:$true] %s16_s13  ;;  %s28_s16 = int_to_ptr.hbm [resolvable:$true] %s27_s16 }
   0x4   :  { %s354_s17 = smov 64   ;;  %s355_s18 = smov 4  }
   0x5   :  { %22 = dma.hbm_to_vmem [thread:$0]  %s15_s11, 128, %s17_s13, [#allocation3], %s354_s17, %s354_s17, %s355_s18  }
   0x6   :  { %s356_s19 = smov [#allocation5]  }
   0x7   :  { %s29_s20 = sshll.u32 %s356_s19, 4  ;;  %s30_s20 = int_to_ptr.vmem [resolvable:$true] %s29_s20 }
   0x8   :  { %35 = dma.hbm_to_vmem [thread:$0]  %s28_s16, 256, %s30_s20, [#allocation6], %s354_s17, %s354_s17, %s355_s18  }
   0x9   :  { %347 = dma.done.wait [#allocation3], 128  }
   0xa   :  { %348 = vsyncadd [#allocation3], 4294967168 }
   0xb   :  { %349 = dma.done.wait [#allocation6], 256  }
   0xc   :  { %350 = vsyncadd [#allocation6], 4294967040  ;;  %v257_v0 = vld [vmem:[#allocation5 + $0x8] sm:$0xff]  ;;  %v256_v1 = vld [vmem:[#allocation5] sm:$0xff]  ;;  %vm68_vm0 = vcmask 261120   ;;  %s357_s0 = smov 112   ;;  %v141_v19 = vlaneseq }
   0xd   :  { %78 = vmatpush.bf16.msra.mxu0 %v257_v0  ;;  %v255_v2 = vld [vmem:[#allocation2] sm:$0xff]  ;;  %vm97_vm1 = vcmask 130048   ;;  %vm148_vm3 = vcmask 64512   ;;  %s358_s1 = smov 96   ;;  %vm178_vm4 = vcmask 1043456   ;;  %s359_s21 = smov [#allocation7]  }
   0xe   :  { %v142_v20 = vshrl.u32 %v141_v19, 7  ;;  %v144_v21 = vand.u32 127, %v141_v19  ;;  %s222_s22 = sshll.u32 %s359_s21, 4  ;;  %s224_s25 = sshll.u32 %s400_s2, 4  ;;  %s223_s22 = int_to_ptr.vmem [resolvable:$true] %s222_s22  ;;  %s225_s25 = int_to_ptr.hbm [resolvable:$true] %s224_s25 }
   0xf   :  { %s360_s26 = smov 128   ;;  %s361_s27 = smov 8  }
  0x10   :  { %vm145_vm2 = vcmp.le.s32.totalorder %v144_v21, %v142_v20 }
  0x11   :  { %79 = vmatpush.bf16.msra.mxu0 %v256_v1 }
  0x14   :  { %250 = vmatmul.msk.bf16.vlgmr.msra.gmra.mxu0 %vm68_vm0, %v255_v2 }
  0x91   :  { %v81_v3 = vpop.f32.mrf.mxu0 }
  0x92   :  { %v90_v4 = vpack.c.bf16 %v81_v3, %v81_v3  ;;  %v86_v13 = vmul.f32 0.25, %v81_v3 }
  0x94   :  { %v93_v5 = vunpack.c.l.b16 %v90_v4  ;;  %v88_v14 = vpack.c.bf16 %v86_v13, %v86_v13 }
  0x96   :  { %v94_v6 = vpack.c.b16 %v93_v5, %v93_v5 }
  0x98   :  { %95 = vrot.lane.b32.xlu0 %v94_v6, %s357_s0 }
  0x99   :  { %v83_v7 = vpop.f32.mrf.mxu0 }
  0x9a   :  { %v91_v8 = vpack.c.bf16 %v83_v7, %v83_v7  ;;  %v87_v17 = vmul.f32 0.25, %v83_v7 }
  0x9c   :  { %v118_v9 = vunpack.c.l.b16 %v91_v8  ;;  %v89_v18 = vpack.c.bf16 %v87_v17, %v87_v17 }
  0x9e   :  { %v119_v10 = vpack.c.b16 %v118_v9, %v118_v9 }
  0xa0   :  { %120 = vrot.lane.b32.xlu0 %v119_v10, %s357_s0 }
 0x10a   :  { %v96_v11 = vpop.permute.xlu0 %95 }
 0x10b   :  { %v102_v12 = vsel %vm97_vm1, %v96_v11, 0 }
 0x10c   :  { %111 = vmatpush.bf16.xpose.msra.mxu1 %v102_v12 }
 0x112   :  { %v121_v15 = vpop.permute.xlu0 %120 }
 0x113   :  { %251 = vmatmul.msk.bf16.vlgmr.msra.gmra.mxu1 %vm97_vm1, %v88_v14  ;;  %v126_v16 = vsel %vm97_vm1, %v121_v15, 0 }
 0x114   :  { %135 = vmatpush.bf16.xpose.msra.mxu2 %v126_v16 }
 0x11b   :  { %252 = vmatmul.msk.bf16.vlgmr.msra.gmra.mxu2 %vm97_vm1, %v89_v18 }
 0x190   :  { %v113_v22 = vpop.f32.mrf.mxu1 }
 0x191   :  { %v146_v23 = vsel %vm145_vm2, %v113_v22, -1e+30 }
 0x192   :  { %v149_v24 = vsel %vm148_vm3, %v146_v23, -inf }
 0x193   :  { %150 = vmax.xlane.f32.xlu1 %v149_v24 }
 0x198   :  { %v115_v25 = vpop.f32.mrf.mxu1 }
 0x19e   :  { %v137_v26 = vpop.f32.mrf.mxu2 }
 0x19f   :  { %v147_v27 = vsel %vm145_vm2, %v137_v26, -1e+30 }
 0x1a0   :  { %v152_v28 = vsel %vm148_vm3, %v147_v27, -inf }
 0x1a1   :  { %153 = vmax.xlane.f32.xlu1 %v152_v28 }
 0x1a6   :  { %v139_v29 = vpop.f32.mrf.mxu2 }
 0x1ba   :  { %195 = vrot.lane.b32.xlu1 %v119_v10, %s358_s1 }
 0x206   :  { %v151_v30 = vpop.xlane.xlu1 %150 }
 0x207   :  { %v155_v31 = vsub.f32 %v146_v23, %v151_v30 }
 0x209   :  { %v157_v32 = vmul.f32 1.442695, %v155_v31 }
 0x20b   :  { %267 = vpow2.f32 %v157_v32 }
 0x211   :  { %v268_v33 = vpop.eup %267 }
 0x212   :  { %v161_v34 = vsel %vm148_vm3, %v268_v33, 0.0 }
 0x213   :  { %162 = vadd.xlane.f32.xlu2 %v161_v34 }
 0x214   :  { %v154_v35 = vpop.xlane.xlu1 %153 }
 0x215   :  { %v156_v36 = vsub.f32 %v147_v27, %v154_v35 }
 0x217   :  { %v159_v37 = vmul.f32 1.442695, %v156_v36 }
 0x219   :  { %269 = vpow2.f32 %v159_v37 }
 0x21f   :  { %v270_v38 = vpop.eup %269 }
 0x220   :  { %v164_v39 = vsel %vm148_vm3, %v270_v38, 0.0 }
 0x221   :  { %165 = vadd.xlane.f32.xlu0 %v164_v39 }
 0x22b   :  { %173 = vrot.lane.b32.xlu2 %v94_v6, %s358_s1 }
 0x22c   :  { %v196_v42 = vpop.permute.xlu1 %195 }
 0x22d   :  { %v201_v46 = vsel %vm178_vm4, %v196_v42, 0 }
 0x286   :  { %v163_v40 = vpop.xlane.xlu2 %162 }
 0x287   :  { %271 = vrcp.f32 %v163_v40 }
 0x28d   :  { %v272_v41 = vpop.eup %271 }
 0x28e   :  { %v174_v43 = vpop.permute.xlu2 %173  ;;  %v169_v44 = vmul.f32 %v272_v41, %v268_v33 }
 0x28f   :  { %v180_v45 = vsel %vm178_vm4, %v174_v43, 0 }
 0x290   :  { %189 = vmatpush.bf16.msra.mxu3 %v180_v45  ;;  %v171_v47 = vpack.c.bf16 %v169_v44, %v169_v44 }
 0x293   :  { %253 = vmatmul.msk.bf16.vlgmr.msra.gmra.mxu3 %vm148_vm3, %v171_v47 }
 0x294   :  { %210 = vmatpush.bf16.msrb.mxu3 %v201_v46  ;;  %v166_v48 = vpop.xlane.xlu0 %165 }
 0x295   :  { %273 = vrcp.f32 %v166_v48 }
 0x29b   :  { %v274_v49 = vpop.eup %273 }
 0x29c   :  { %v170_v50 = vmul.f32 %v274_v49, %v270_v38 }
 0x29e   :  { %v172_v51 = vpack.c.bf16 %v170_v50, %v170_v50 }
 0x2a3   :  { %254 = vmatmul.msk.bf16.vlgmr.msrb.gmra.mxu3 %vm148_vm3, %v172_v51 }
 0x316   :  { %v191_v52 = vpop.f32.mrf.mxu3 }
 0x317   :  { %216 = vst.msk [vmem:[#allocation7] sm:$0xff] %vm97_vm1, %v191_v52 }
 0x31e   :  { %v193_v53 = vpop.f32.mrf.mxu3 }
 0x326   :  { %v212_v54 = vpop.f32.mrf.mxu3 }
 0x327   :  { %217 = vst.msk [vmem:[#allocation7 + $0x8] sm:$0xff] %vm97_vm1, %v212_v54 }
 0x328   :  { %230 = dma.vmem_to_hbm [thread:$0]  %s223_s22, 256, %s225_s25, [#allocation4], %s360_s26, %s360_s26, %s361_s27  }
 0x32e   :  { %v214_v55 = vpop.f32.mrf.mxu3 }
 0x32f   :  { %351 = dma.done.wait [#allocation4], 256  }
 0x330   :  { %352 = vsyncadd [#allocation4], 4294967040 }
 0x331   :  { %235 = vsyncpa [#allocation3], 1 }
 0x332   :  { %236 = vsyncpa [#allocation6], 1 }
 0x333   :  { %237 = vsyncpa [#allocation4], 1 }

</bundles_post_ra>
